<compile_context>
chip_gen: v5e
topology: v5e:2x2
jax: 0.10.0
libtpu: 0.0.40
codegen_flags: <defaults>
</compile_context>

<pallas_src>
import functools

import jax
import jax.numpy as jnp
from jax.experimental import pallas as pl
from jax.experimental.pallas import tpu as pltpu


# ----------------------------- Pallas kernel ------------------------------ #
def _discriminator_kernel(n_layers,
                          x_ref, y_ref,
                          w_pre_ref, vec_ref, w_hid_ref,
                          w_head_ref, b_head_ref,
                          out_ref):
    x = x_ref[...]                      # (TB, n_in)  f32
    y = y_ref[...]                      # (TB, 1)     f32
    vec = vec_ref[...]                  # (1 + 2*n_layers, H) f32
    b_pre = vec[0:1, :]                 # (1, H)

    # h = ReLU(self.pre(x))    -- bf16 operands, f32 accumulation on the MXU
    h = jnp.dot(x.astype(jnp.bfloat16), w_pre_ref[...],
                preferred_element_type=jnp.float32) + b_pre
    h = jnp.maximum(h, 0.0)

    # hidden stack: Linear(cat(h, y_proj)) + LeakyReLU(0.2), static unroll.
    # The y_proj contribution is a rank-1 broadcast FMA (precomputed a_j, c_j).
    for j in range(n_layers):
        a_j = vec[1 + j:2 + j, :]                           # (1, H)
        c_j = vec[1 + n_layers + j:2 + n_layers + j, :]     # (1, H)
        z = (jnp.dot(h.astype(jnp.bfloat16), w_hid_ref[j],
                     preferred_element_type=jnp.float32)
             + y * a_j + c_j)
        h = jnp.maximum(z, 0.2 * z)     # LeakyReLU(0.2), single VPU max

    # Fused heads: one lane-dense (TB, 128) store (phi | pred_z | pred_y | pad).
    out_ref[...] = (jnp.dot(h.astype(jnp.bfloat16), w_head_ref[...],
                            preferred_element_type=jnp.float32)
                    + b_head_ref[...])


def discriminator_forward(x, y, params, n_layers):
    B, n_in = x.shape
    n_hidden = params["w_pre"].shape[1]
    z_dim = params["w_pz"].shape[1]

    # ---- fold the y path algebraically (wrapper-side, one time) ---- #
    # y_proj @ W_y[j] = y * (w_emb @ W_y[j]) + (b_emb @ W_y[j])
    w_emb, b_emb = params["w_emb"], params["b_emb"]          # (1, H) each
    a_rows = [w_emb @ params["w_hid_y"][j] for j in range(n_layers)]
    c_rows = [b_emb @ params["w_hid_y"][j] + params["b_hid"][j]
              for j in range(n_layers)]
    # packed small-vector slab: [b_pre ; a_0..a_{L-1} ; c_0..c_{L-1}]
    vec = jnp.concatenate([params["b_pre"]] + a_rows + c_rows, axis=0)

    # ---- matmul weights in bf16 (native MXU dtype) ---- #
    w_pre = params["w_pre"].astype(jnp.bfloat16)              # (n_in, H)
    w_hid = params["w_hid_h"].astype(jnp.bfloat16)            # (L, H, H) 3-D

    # fused, lane-padded heads: columns = [phi(1) | pred_z(z_dim) | pred_y(1) | 0]
    n_head = z_dim + 2
    head_pad = ((n_head + 127) // 128) * 128
    w_head = jnp.concatenate([params["w_phi"], params["w_pz"], params["w_py"]],
                             axis=1)
    w_head = jnp.pad(w_head, ((0, 0), (0, head_pad - n_head))).astype(jnp.bfloat16)
    b_head = jnp.concatenate([params["b_phi"], params["b_pz"], params["b_py"]],
                             axis=1)
    b_head = jnp.pad(b_head, ((0, 0), (0, head_pad - n_head)))

    # ---- batch tiling ---- #
    TB = 256 if B >= 256 else max(8, ((B + 7) // 8) * 8)
    B_pad = ((B + TB - 1) // TB) * TB
    if B_pad != B:
        x = jnp.pad(x, ((0, B_pad - B), (0, 0)))
        y = jnp.pad(y, ((0, B_pad - B), (0, 0)))
    grid = (B_pad // TB,)

    out = pl.pallas_call(
        functools.partial(_discriminator_kernel, n_layers),
        out_shape=jax.ShapeDtypeStruct((B_pad, head_pad), jnp.float32),
        grid=grid,
        in_specs=[
            pl.BlockSpec((TB, n_in), lambda i: (i, 0)),          # x tile
            pl.BlockSpec((TB, 1), lambda i: (i, 0)),             # y tile
            pl.BlockSpec(w_pre.shape, lambda i: (0, 0)),          # resident weights
            pl.BlockSpec(vec.shape, lambda i: (0, 0)),
            pl.BlockSpec(w_hid.shape, lambda i: (0, 0, 0)),
            pl.BlockSpec(w_head.shape, lambda i: (0, 0)),
            pl.BlockSpec(b_head.shape, lambda i: (0, 0)),
        ],
        out_specs=pl.BlockSpec((TB, head_pad), lambda i: (i, 0)),
        compiler_params=pltpu.CompilerParams(
            dimension_semantics=("parallel",),        # shards grid over v7x's 2 TCs
            vmem_limit_bytes=32 << 20),
    )(x, y, w_pre, vec, w_hid, w_head, b_head)

    out = out[:B]
    rf = out[:, 0:1]
    pz = out[:, 1:1 + z_dim]
    py = out[:, 1 + z_dim:2 + z_dim]
    return rf, pz, py


# ------------------------- parameter initialization ------------------------ #
def _xavier_uniform(key, fan_in, fan_out):
    # matches nn.init.xavier_uniform(weight, gain=1.0); stored as (in, out)
    bound = (6.0 / (fan_in + fan_out)) ** 0.5
    return jax.random.uniform(key, (fan_in, fan_out), jnp.float32, -bound, bound)


def _default_bias(key, fan_in, fan_out):
    # matches nn.Linear default bias init: U(-1/sqrt(fan_in), 1/sqrt(fan_in))
    bound = 1.0 / (fan_in ** 0.5)
    return jax.random.uniform(key, (1, fan_out), jnp.float32, -bound, bound)


def _spectral_normalize(w, key, n_iter=1, eps=1e-12):
    # PyTorch spectral_norm: W_sn = W / sigma, one power iteration, random u init.
    # w is (in, out) here; sigma of W^T equals sigma of W.
    u = jax.random.normal(key, (w.shape[1],), jnp.float32)
    u = u / (jnp.linalg.norm(u) + eps)
    v = w @ u
    v = v / (jnp.linalg.norm(v) + eps)
    for _ in range(max(n_iter - 1, 0)):
        u = w.T @ v
        u = u / (jnp.linalg.norm(u) + eps)
        v = w @ u
        v = v / (jnp.linalg.norm(v) + eps)
    u = w.T @ v
    u = u / (jnp.linalg.norm(u) + eps)
    sigma = v @ (w @ u)
    return w / sigma


def init_discriminator_params(key, n_in, n_hidden, n_layers, z_dim):
    ks = iter(jax.random.split(key, 32 + 4 * n_layers))
    p = {}

    # pre: spectral_norm(Linear(n_in, n_hidden))
    w = _xavier_uniform(next(ks), n_in, n_hidden)
    p["w_pre"] = _spectral_normalize(w, next(ks))
    p["b_pre"] = _default_bias(next(ks), n_in, n_hidden)

    # embed: spectral_norm(Linear(1, n_hidden))
    w = _xavier_uniform(next(ks), 1, n_hidden)
    p["w_emb"] = _spectral_normalize(w, next(ks))
    p["b_emb"] = _default_bias(next(ks), 1, n_hidden)

    # hidden[j]: spectral_norm(Linear(2*n_hidden, n_hidden))
    wh, wy, bh = [], [], []
    for _ in range(n_layers):
        w = _xavier_uniform(next(ks), 2 * n_hidden, n_hidden)
        w = _spectral_normalize(w, next(ks))
        wh.append(w[:n_hidden, :])   # multiplies h
        wy.append(w[n_hidden:, :])   # multiplies y_proj
        bh.append(_default_bias(next(ks), 2 * n_hidden, n_hidden))
    p["w_hid_h"] = jnp.stack(wh)                     # (n_layers, H, H)
    p["w_hid_y"] = jnp.stack(wy)                     # (n_layers, H, H)
    p["b_hid"] = jnp.stack(bh)                       # (n_layers, 1, H)

    # phi: spectral_norm(Linear(n_hidden, 1))
    w = _xavier_uniform(next(ks), n_hidden, 1)
    p["w_phi"] = _spectral_normalize(w, next(ks))
    p["b_phi"] = _default_bias(next(ks), n_hidden, 1)

    # pred_z: Linear(n_hidden, z_dim)  (no spectral norm)
    p["w_pz"] = _xavier_uniform(next(ks), n_hidden, z_dim)
    p["b_pz"] = _default_bias(next(ks), n_hidden, z_dim)

    # pred_y: Linear(n_hidden, 1)  (no spectral norm)
    p["w_py"] = _xavier_uniform(next(ks), n_hidden, 1)
    p["b_py"] = _default_bias(next(ks), n_hidden, 1)

    # NOTE: self.y_proj exists in __init__ but is unused in forward -> omitted.
    return p


# ------------------------------- reference --------------------------------- #
def reference_forward(x, y, params, n_layers):
    y_proj = y @ params["w_emb"] + params["b_emb"]
    h = jnp.maximum(x @ params["w_pre"] + params["b_pre"], 0.0)
    for j in range(n_layers):
        z = (h @ params["w_hid_h"][j] + y_proj @ params["w_hid_y"][j]
             + params["b_hid"][j])
        h = jnp.where(z > 0, z, 0.2 * z)
    rf = h @ params["w_phi"] + params["b_phi"]
    pz = h @ params["w_pz"] + params["b_pz"]
    py = h @ params["w_py"] + params["b_py"]
    return rf, pz, py


# --------------------------------- main ------------------------------------ #
if __name__ == "__main__":
    B, n_in, n_hidden, n_layers, z_dim = 8, 32, 32, 2, 8

    key = jax.random.PRNGKey(0)
    k_params, k_x, k_y = jax.random.split(key, 3)

    params = init_discriminator_params(k_params, n_in, n_hidden, n_layers, z_dim)
    x = jax.random.normal(k_x, (B, n_in), jnp.float32)
    y = jax.random.normal(k_y, (B, 1), jnp.float32)

    rf, pz, py = discriminator_forward(x, y, params, n_layers)
    jax.block_until_ready((rf, pz, py))

    rf_ref, pz_ref, py_ref = reference_forward(x, y, params, n_layers)
    assert rf.shape == (B, 1) and pz.shape == (B, z_dim) and py.shape == (B, 1)
    # bf16 matmul operands with f32 accumulation -> loosened tolerance.
    assert jnp.allclose(rf, rf_ref, atol=2e-2, rtol=2e-2)
    assert jnp.allclose(pz, pz_ref, atol=2e-2, rtol=2e-2)
    assert jnp.allclose(py, py_ref, atol=2e-2, rtol=2e-2)

    print("KERNEL_OK")
</pallas_src>

<mosaic_0001>
module attributes {stable_mosaic.version = 11 : i64} {
  func.func @_discriminator_kernel(%arg0: i32, %arg1: memref<8x32xf32, #tpu.memory_space<vmem>>, %arg2: memref<8x1xf32, #tpu.memory_space<vmem>>, %arg3: memref<32x32xbf16, #tpu.memory_space<vmem>>, %arg4: memref<5x32xf32, #tpu.memory_space<vmem>>, %arg5: memref<2x32x32xbf16, #tpu.memory_space<vmem>>, %arg6: memref<32x128xbf16, #tpu.memory_space<vmem>>, %arg7: memref<1x128xf32, #tpu.memory_space<vmem>>, %arg8: memref<8x128xf32, #tpu.memory_space<vmem>>) attributes {dimension_semantics = [#tpu.dimension_semantics<parallel>], iteration_bounds = array<i64: 1>, scalar_prefetch = 0 : i64, scratch_operands = 0 : i64, tpu.core_type = #tpu.core_type<tc>, window_params = [{transform_indices = @transform_0, window_bounds = array<i64: 8, 32>}, {transform_indices = @transform_1, window_bounds = array<i64: 8, 1>}, {pipeline_mode = #tpu.pipeline_mode<synchronous>, transform_indices = @transform_2, window_bounds = array<i64: 32, 32>}, {pipeline_mode = #tpu.pipeline_mode<synchronous>, transform_indices = @transform_3, window_bounds = array<i64: 5, 32>}, {pipeline_mode = #tpu.pipeline_mode<synchronous>, transform_indices = @transform_4, window_bounds = array<i64: 2, 32, 32>}, {pipeline_mode = #tpu.pipeline_mode<synchronous>, transform_indices = @transform_5, window_bounds = array<i64: 32, 128>}, {pipeline_mode = #tpu.pipeline_mode<synchronous>, transform_indices = @transform_6, window_bounds = array<i64: 1, 128>}, {transform_indices = @transform_7, window_bounds = array<i64: 8, 128>}]} {
    %c0 = arith.constant 0 : index
    %c0_0 = arith.constant 0 : index
    %0 = vector.load %arg1[%c0, %c0_0] : memref<8x32xf32, #tpu.memory_space<vmem>>, vector<8x32xf32>
    %c0_1 = arith.constant 0 : index
    %c0_2 = arith.constant 0 : index
    %1 = vector.load %arg2[%c0_1, %c0_2] : memref<8x1xf32, #tpu.memory_space<vmem>>, vector<8x1xf32>
    %c0_3 = arith.constant 0 : index
    %c0_4 = arith.constant 0 : index
    %2 = vector.load %arg4[%c0_3, %c0_4] : memref<5x32xf32, #tpu.memory_space<vmem>>, vector<5x32xf32>
    %3 = vector.extract_strided_slice %2 {offsets = [0, 0], sizes = [1, 32], strides = [1, 1]} : vector<5x32xf32> to vector<1x32xf32>
    %4 = arith.truncf %0 : vector<8x32xf32> to vector<8x32xbf16>
    %c0_5 = arith.constant 0 : index
    %c0_6 = arith.constant 0 : index
    %5 = vector.load %arg3[%c0_5, %c0_6] : memref<32x32xbf16, #tpu.memory_space<vmem>>, vector<32x32xbf16>
    %cst = arith.constant dense<0.000000e+00> : vector<8x32xf32>
    %6 = tpu.matmul %4, %5, %cst {dimension_numbers = #tpu.dot_dimension_numbers<[1], [0], [0], [1], [0, 0, 1, 1], [], []>} : vector<8x32xbf16>, vector<32x32xbf16>, vector<8x32xf32> -> vector<8x32xf32>
    %7 = vector.broadcast %3 : vector<1x32xf32> to vector<8x32xf32>
    %8 = arith.addf %6, %7 : vector<8x32xf32>
    %cst_7 = arith.constant 0.000000e+00 : f32
    %9 = vector.broadcast %cst_7 : f32 to vector<8x32xf32>
    %10 = arith.maximumf %8, %9 : vector<8x32xf32>
    %11 = vector.extract_strided_slice %2 {offsets = [1, 0], sizes = [1, 32], strides = [1, 1]} : vector<5x32xf32> to vector<1x32xf32>
    %12 = vector.extract_strided_slice %2 {offsets = [3, 0], sizes = [1, 32], strides = [1, 1]} : vector<5x32xf32> to vector<1x32xf32>
    %13 = arith.truncf %10 : vector<8x32xf32> to vector<8x32xbf16>
    %c0_8 = arith.constant 0 : index
    %c0_9 = arith.constant 0 : index
    %c0_10 = arith.constant 0 : index
    %14 = vector.load %arg5[%c0_8, %c0_9, %c0_10] : memref<2x32x32xbf16, #tpu.memory_space<vmem>>, vector<1x32x32xbf16>
    %15 = vector.shape_cast %14 : vector<1x32x32xbf16> to vector<32x32xbf16>
    %cst_11 = arith.constant dense<0.000000e+00> : vector<8x32xf32>
    %16 = tpu.matmul %13, %15, %cst_11 {dimension_numbers = #tpu.dot_dimension_numbers<[1], [0], [0], [1], [0, 0, 1, 1], [], []>} : vector<8x32xbf16>, vector<32x32xbf16>, vector<8x32xf32> -> vector<8x32xf32>
    %17 = vector.broadcast %1 : vector<8x1xf32> to vector<8x32xf32>
    %18 = vector.broadcast %11 : vector<1x32xf32> to vector<8x32xf32>
    %19 = arith.mulf %17, %18 : vector<8x32xf32>
    %20 = arith.addf %16, %19 : vector<8x32xf32>
    %21 = vector.broadcast %12 : vector<1x32xf32> to vector<8x32xf32>
    %22 = arith.addf %20, %21 : vector<8x32xf32>
    %cst_12 = arith.constant 2.000000e-01 : f32
    %23 = vector.broadcast %cst_12 : f32 to vector<8x32xf32>
    %24 = arith.mulf %23, %22 : vector<8x32xf32>
    %25 = arith.maximumf %22, %24 : vector<8x32xf32>
    %26 = vector.extract_strided_slice %2 {offsets = [2, 0], sizes = [1, 32], strides = [1, 1]} : vector<5x32xf32> to vector<1x32xf32>
    %27 = vector.extract_strided_slice %2 {offsets = [4, 0], sizes = [1, 32], strides = [1, 1]} : vector<5x32xf32> to vector<1x32xf32>
    %28 = arith.truncf %25 : vector<8x32xf32> to vector<8x32xbf16>
    %c1 = arith.constant 1 : index
    %c0_13 = arith.constant 0 : index
    %c0_14 = arith.constant 0 : index
    %29 = vector.load %arg5[%c1, %c0_13, %c0_14] : memref<2x32x32xbf16, #tpu.memory_space<vmem>>, vector<1x32x32xbf16>
    %30 = vector.shape_cast %29 : vector<1x32x32xbf16> to vector<32x32xbf16>
    %cst_15 = arith.constant dense<0.000000e+00> : vector<8x32xf32>
    %31 = tpu.matmul %28, %30, %cst_15 {dimension_numbers = #tpu.dot_dimension_numbers<[1], [0], [0], [1], [0, 0, 1, 1], [], []>} : vector<8x32xbf16>, vector<32x32xbf16>, vector<8x32xf32> -> vector<8x32xf32>
    %32 = vector.broadcast %1 : vector<8x1xf32> to vector<8x32xf32>
    %33 = vector.broadcast %26 : vector<1x32xf32> to vector<8x32xf32>
    %34 = arith.mulf %32, %33 : vector<8x32xf32>
    %35 = arith.addf %31, %34 : vector<8x32xf32>
    %36 = vector.broadcast %27 : vector<1x32xf32> to vector<8x32xf32>
    %37 = arith.addf %35, %36 : vector<8x32xf32>
    %cst_16 = arith.constant 2.000000e-01 : f32
    %38 = vector.broadcast %cst_16 : f32 to vector<8x32xf32>
    %39 = arith.mulf %38, %37 : vector<8x32xf32>
    %40 = arith.maximumf %37, %39 : vector<8x32xf32>
    %41 = arith.truncf %40 : vector<8x32xf32> to vector<8x32xbf16>
    %c0_17 = arith.constant 0 : index
    %c0_18 = arith.constant 0 : index
    %42 = vector.load %arg6[%c0_17, %c0_18] : memref<32x128xbf16, #tpu.memory_space<vmem>>, vector<32x128xbf16>
    %cst_19 = arith.constant dense<0.000000e+00> : vector<8x128xf32>
    %43 = tpu.matmul %41, %42, %cst_19 {dimension_numbers = #tpu.dot_dimension_numbers<[1], [0], [0], [1], [0, 0, 1, 1], [], []>} : vector<8x32xbf16>, vector<32x128xbf16>, vector<8x128xf32> -> vector<8x128xf32>
    %c0_20 = arith.constant 0 : index
    %c0_21 = arith.constant 0 : index
    %44 = vector.load %arg7[%c0_20, %c0_21] : memref<1x128xf32, #tpu.memory_space<vmem>>, vector<1x128xf32>
    %45 = vector.broadcast %44 : vector<1x128xf32> to vector<8x128xf32>
    %46 = arith.addf %43, %45 : vector<8x128xf32>
    %c0_22 = arith.constant 0 : index
    %c0_23 = arith.constant 0 : index
    %47 = vector.load %arg8[%c0_22, %c0_23] : memref<8x128xf32, #tpu.memory_space<vmem>>, vector<8x128xf32>
    tpu.vector_store %arg8[%c0_22, %c0_23], %46 {strides = array<i32>} : memref<8x128xf32, #tpu.memory_space<vmem>>, vector<8x128xf32>,
    return
  }
  func.func @transform_0(%arg0: i32) -> (i32, i32) {
    %c0_i32 = arith.constant 0 : i32
    %c0_i32_0 = arith.constant 0 : i32
    return %arg0, %c0_i32 : i32, i32
  }
  func.func @transform_1(%arg0: i32) -> (i32, i32) {
    %c0_i32 = arith.constant 0 : i32
    %c0_i32_0 = arith.constant 0 : i32
    return %arg0, %c0_i32 : i32, i32
  }
  func.func @transform_2(%arg0: i32) -> (i32, i32) {
    %c0_i32 = arith.constant 0 : i32
    %c0_i32_0 = arith.constant 0 : i32
    %c0_i32_1 = arith.constant 0 : i32
    return %c0_i32, %c0_i32_0 : i32, i32
  }
  func.func @transform_3(%arg0: i32) -> (i32, i32) {
    %c0_i32 = arith.constant 0 : i32
    %c0_i32_0 = arith.constant 0 : i32
    %c0_i32_1 = arith.constant 0 : i32
    return %c0_i32, %c0_i32_0 : i32, i32
  }
  func.func @transform_4(%arg0: i32) -> (i32, i32, i32) {
    %c0_i32 = arith.constant 0 : i32
    %c0_i32_0 = arith.constant 0 : i32
    %c0_i32_1 = arith.constant 0 : i32
    %c0_i32_2 = arith.constant 0 : i32
    return %c0_i32, %c0_i32_0, %c0_i32_1 : i32, i32, i32
  }
  func.func @transform_5(%arg0: i32) -> (i32, i32) {
    %c0_i32 = arith.constant 0 : i32
    %c0_i32_0 = arith.constant 0 : i32
    %c0_i32_1 = arith.constant 0 : i32
    return %c0_i32, %c0_i32_0 : i32, i32
  }
  func.func @transform_6(%arg0: i32) -> (i32, i32) {
    %c0_i32 = arith.constant 0 : i32
    %c0_i32_0 = arith.constant 0 : i32
    %c0_i32_1 = arith.constant 0 : i32
    return %c0_i32, %c0_i32_0 : i32, i32
  }
  func.func @transform_7(%arg0: i32) -> (i32, i32) {
    %c0_i32 = arith.constant 0 : i32
    %c0_i32_0 = arith.constant 0 : i32
    return %arg0, %c0_i32 : i32, i32
  }
}

</mosaic_0001>

<bundles_post_ra>
// kernel: tpu_custom_call.1
= control target key start
LH: loop header
LB: loop body
LE: loop exit
PB: predicated region body
PF: predicated region fallthrough
CT: control target
= control target key end

     0   :  { %12 = vsyncpa [#allocation3], 0  ;;  %s527_s0 = inlined_call_operand.vmem [shape: f32[8,32], index: 0, kind: input, shape index: {}]   ;;  %s528_s1 = inlined_call_operand.vmem [shape: f32[8,1], index: 1, kind: input, shape index: {}]   ;;  %s529_s2 = inlined_call_operand.hbm [shape: bf16[32,32], index: 2, kind: input, shape index: {}]   ;;  %s530_s3 = inlined_call_operand.hbm [shape: f32[5,32], index: 3, kind: input, shape index: {}]   ;;  %s531_s4 = inlined_call_operand.hbm [shape: bf16[2,32,32], index: 4, kind: input, shape index: {}]   ;;  %s532_s5 = inlined_call_operand.hbm [shape: bf16[32,128], index: 5, kind: input, shape index: {}]   ;;  %s533_s6 = inlined_call_operand.vmem [shape: f32[1,128], index: 6, kind: input, shape index: {}]   ;;  %s534_s7 = inlined_call_operand.hbm [shape: f32[8,128], index: 7, kind: output, shape index: {}]  }
   0x1   :  { %13 = vsyncpa [#allocation6], 0 }
   0x2   :  { %14 = vsyncpa [#allocation9], 0  ;;  %s38_s26 = sshll.u32 %s530_s3, 4  ;;  %s39_s26 = int_to_ptr.hbm [resolvable:$true] %s38_s26 }
   0x3   :  { %15 = vsyncpa [#allocation4], 0  ;;  %s451_s27 = smov [#allocation5]   ;;  %s24_s8 = sshll.u32 %s529_s2, 4  ;;  %s25_s8 = int_to_ptr.hbm [resolvable:$true] %s24_s8 }
   0x4   :  { %s40_s28 = sshll.u32 %s451_s27, 4  ;;  %s452_s9 = smov [#allocation2]   ;;  %s41_s28 = int_to_ptr.vmem [resolvable:$true] %s40_s28 }
   0x5   :  { %43 = dma.hbm_to_vmem [thread:$0]  %s39_s26, 128, %s41_s28, [#allocation6]  }
   0x6   :  { %s26_s10 = sshll.u32 %s452_s9, 4  ;;  %s453_s11 = smov 64   ;;  %s27_s10 = int_to_ptr.vmem [resolvable:$true] %s26_s10 }
   0x7   :  { %s454_s12 = smov 4   ;;  %s48_s3 = sshll.u32 %s531_s4, 4  ;;  %s49_s3 = int_to_ptr.hbm [resolvable:$true] %s48_s3 }
   0x8   :  { %32 = dma.hbm_to_vmem [thread:$0]  %s25_s8, 256, %s27_s10, [#allocation3], %s453_s11, %s453_s11, %s454_s12  }
   0x9   :  { %s455_s15 = smov [#allocation7]   ;;  %s61_s2 = sshll.u32 %s532_s5, 4  ;;  %s62_s2 = int_to_ptr.hbm [resolvable:$true] %s61_s2 }
   0xa   :  { %s50_s16 = sshll.u32 %s455_s15, 4  ;;  %s456_s19 = smov [#allocation8]   ;;  %s51_s16 = int_to_ptr.vmem [resolvable:$true] %s50_s16 }
   0xb   :  { %56 = dma.hbm_to_vmem [thread:$0]  %s49_s3, 512, %s51_s16, [#allocation6], %s453_s11, %s453_s11, %s454_s12  }
   0xc   :  { %s63_s20 = sshll.u32 %s456_s19, 4  ;;  %s64_s20 = int_to_ptr.vmem [resolvable:$true] %s63_s20 }
   0xd   :  { %69 = dma.hbm_to_vmem [thread:$0]  %s62_s2, 256, %s64_s20, [#allocation9], %s453_s11, %s453_s11, %s454_s12  }
   0xe   :  { %443 = dma.done.wait [#allocation3], 256  }
   0xf   :  { %444 = vsyncadd [#allocation3], 4294967040 }
  0x10   :  { %445 = dma.done.wait [#allocation6], 640  }
  0x11   :  { %446 = vsyncadd [#allocation6], 4294966656 }
  0x12   :  { %447 = dma.done.wait [#allocation9], 256  }
  0x13   :  { %448 = vsyncadd [#allocation9], 4294967040  ;;  %v306_v0 = vld [vmem:[#allocation2 + $0x8] sm:$0xff]  ;;  %v305_v1 = vld [vmem:[#allocation2] sm:$0xff]  ;;  %vm110_vm0 = vcmask 261120   ;;  %v457_v7 = vmov 0  }
  0x14   :  { %120 = vmatpush.bf16.msra.mxu0 %v306_v0  ;;  %v89_v2 = vld [vmem:[%s527_s0] sm:$0xff]  ;;  %v307_v5 = vld [vmem:[#allocation7] sm:$0xff]  ;;  %321 = vset.pattern.permute.xlu0 %v457_v7  ;;  %v91_v8 = vld [vmem:[#allocation5] sm:$0x1f]  ;;  %s458_s23 = smov [#allocation10]   ;;  %s257_s27 = sshll.u32 %s534_s7, 4  ;;  %s258_s27 = int_to_ptr.hbm [resolvable:$true] %s257_s27 }
  0x15   :  { %v92_v3 = vpack.c.bf16 %v89_v2, %v89_v2  ;;  %v308_v4 = vld [vmem:[#allocation7 + $0x8] sm:$0xff]  ;;  %v97_v9 = vperm.slane %v91_v8, 0  ;;  %v310_v15 = vld [vmem:[#allocation7 + $0x18] sm:$0xff]  ;;  %v309_v16 = vld [vmem:[#allocation7 + $0x10] sm:$0xff]  ;;  %v138_v17 = vperm.slane %v91_v8, 1  ;;  %v168_v20 = vperm.slane %v91_v8, 3 }
  0x16   :  { %161 = vmatpush.bf16.msra.mxu1 %v308_v4  ;;  %v90_v6 = vld [vmem:[%s528_s1] sm:$0xff]  ;;  %201 = vmatpush.bf16.msra.mxu2 %v310_v15  ;;  %v311_v29 = vld [vmem:[#allocation8] sm:$0xff]  ;;  %v178_v30 = vperm.slane %v91_v8, 2  ;;  %v208_v32 = vperm.slane %v91_v8, 4  ;;  %s255_s24 = sshll.u32 %s458_s23, 4  ;;  %s256_s24 = int_to_ptr.vmem [resolvable:$true] %s255_s24 }
  0x17   :  { %135 = vperm.xlu0 %321, %v90_v6   ;;  %v312_v28 = vld [vmem:[#allocation8 + $0x8] sm:$0xff] }
  0x18   :  { %121 = vmatpush.bf16.msra.mxu0 %v305_v1  ;;  %242 = vmatpush.bf16.msra.mxu3 %v312_v28  ;;  %v322_v40 = vld [vmem:[%s533_s6] ss:$0 sm:$0xff] }
  0x1a   :  { %162 = vmatpush.bf16.msra.mxu1 %v307_v5  ;;  %202 = vmatpush.bf16.msra.mxu2 %v309_v16 }
  0x1b   :  { %277 = vmatmul.msk.bf16.vlgmr.msra.gmra.mxu0 %vm110_vm0, %v92_v3 }
  0x1c   :  { %243 = vmatpush.bf16.msra.mxu3 %v311_v29 }
  0x89   :  { %v136_v18 = vpop.permute.xlu0 %135 }
  0x8a   :  { %v139_v19 = vmul.f32 %v138_v17, %v136_v18  ;;  %v179_v31 = vmul.f32 %v178_v30, %v136_v18 }
  0x98   :  { %v123_v10 = vpop.f32.mrf.mxu0 }
  0x99   :  { %v124_v11 = vadd.f32 %v123_v10, %v97_v9 }
  0x9b   :  { %v127_v12 = vmax.f32 %v124_v11, 0.0 }
  0x9d   :  { %v128_v13 = vpack.c.bf16 %v127_v12, %v127_v12 }
  0x9f   :  { %286 = vmatmul.msk.bf16.vlgmr.msra.gmra.mxu1 %vm110_vm0, %v128_v13 }
  0xa0   :  { %v125_v14 = vpop.f32.mrf.mxu0 }
 0x11c   :  { %v164_v21 = vpop.f32.mrf.mxu1 }
 0x11d   :  { %v165_v22 = vadd.f32 %v164_v21, %v139_v19 }
 0x11f   :  { %v169_v23 = vadd.f32 %v168_v20, %v165_v22 }
 0x121   :  { %v170_v24 = vmul.f32 0.2, %v169_v23 }
 0x123   :  { %v171_v25 = vmax.f32 %v169_v23, %v170_v24 }
 0x124   :  { %v166_v26 = vpop.f32.mrf.mxu1 }
 0x125   :  { %v172_v27 = vpack.c.bf16 %v171_v25, %v171_v25 }
 0x127   :  { %295 = vmatmul.msk.bf16.vlgmr.msra.gmra.mxu2 %vm110_vm0, %v172_v27 }
 0x1aa   :  { %v204_v33 = vpop.f32.mrf.mxu2 }
 0x1ab   :  { %v205_v34 = vadd.f32 %v204_v33, %v179_v31 }
 0x1ad   :  { %v209_v35 = vadd.f32 %v208_v32, %v205_v34 }
 0x1af   :  { %v210_v36 = vmul.f32 0.2, %v209_v35 }
 0x1b1   :  { %v211_v37 = vmax.f32 %v209_v35, %v210_v36 }
 0x1b2   :  { %v206_v38 = vpop.f32.mrf.mxu2 }
 0x1b3   :  { %v212_v39 = vpack.c.bf16 %v211_v37, %v211_v37 }
 0x1b5   :  { %304 = vmatmul.msk.bf16.vlgmr.msra.gmra.mxu3 %vm110_vm0, %v212_v39 }
 0x238   :  { %v245_v41 = vpop.f32.mrf.mxu3 }
 0x239   :  { %v246_v42 = vadd.f32 %v322_v40, %v245_v41 }
 0x23b   :  { %249 = vst [vmem:[#allocation10] sm:$0xff] %v246_v42 }
 0x23c   :  { %260 = dma.vmem_to_hbm [thread:$0]  %s256_s24, 128, %s258_s27, [#allocation4]  }
 0x240   :  { %v247_v43 = vpop.f32.mrf.mxu3 }
 0x241   :  { %449 = dma.done.wait [#allocation4], 128  }
 0x242   :  { %450 = vsyncadd [#allocation4], 4294967168 }
 0x243   :  { %265 = vsyncpa [#allocation3], 1 }
 0x244   :  { %266 = vsyncpa [#allocation6], 1 }
 0x245   :  { %267 = vsyncpa [#allocation9], 1 }
 0x246   :  { %268 = vsyncpa [#allocation4], 1 }

</bundles_post_ra>
